<compile_context>
chip_gen: v7x
topology: tpu7x:2x2x1
jax: 0.10.0
libtpu: 0.0.40
codegen_flags: <defaults>
</compile_context>

<pallas_src>
import jax
import jax.numpy as jnp
from jax.experimental import pallas as pl
from jax.experimental.pallas import tpu as pltpu

SMOOTHING = 0.05
CONFIDENCE = 1.0 - SMOOTHING


# --------------------------------------------------------------------------
# Kernels
# --------------------------------------------------------------------------
def _label_smoothing_dense_kernel(x_ref, t_ref, out_ref):
    """Dense (soft) targets: loss_row = -sum(logprobs * (conf*t + smooth/C))."""
    x = x_ref[...].astype(jnp.float32)          # (tile_n, C)
    t = t_ref[...].astype(jnp.float32)          # (tile_n, C)
    c = x.shape[-1]

    # Fused weight: exact rewrite of conf*nll + smooth*smooth_loss for any
    # target (soft or one-hot); one lane reduction instead of two.
    w = CONFIDENCE * t + jnp.float32(SMOOTHING / c)

    # Numerically-stable log_softmax over the class (lane) axis.
    m = jnp.max(x, axis=-1, keepdims=True)
    shifted = x - m
    lse = jnp.log(jnp.sum(jnp.exp(shifted), axis=-1, keepdims=True))
    logprobs = shifted - lse                    # (tile_n, C)

    out_ref[...] = -jnp.sum(logprobs * w, axis=-1, keepdims=True)  # (tile_n, 1)


def _label_smoothing_int_kernel(labels_ref, x_ref, out_ref):
    """Integer class labels: no dense target stream at all.

    loss_row = conf*(lse - shifted[label]) + smooth*(lse - mean(shifted)),
    which equals conf*(-logprob[label]) + smooth*(-mean(logprobs)).
    """
    x = x_ref[...].astype(jnp.float32)          # (tile_n, C)
    labels = labels_ref[...]                    # (tile_n, 1) int32
    tile_n, c = x.shape

    m = jnp.max(x, axis=-1, keepdims=True)
    shifted = x - m
    lse = jnp.log(jnp.sum(jnp.exp(shifted), axis=-1, keepdims=True))   # (tile_n,1)

    col = jax.lax.broadcasted_iota(jnp.int32, (tile_n, c), 1)
    sel = jnp.where(col == labels, shifted, jnp.float32(0.0))
    shifted_at_label = jnp.sum(sel, axis=-1, keepdims=True)            # (tile_n,1)
    mean_shifted = jnp.sum(shifted, axis=-1, keepdims=True) * jnp.float32(1.0 / c)

    out_ref[...] = (CONFIDENCE * (lse - shifted_at_label)
                    + SMOOTHING * (lse - mean_shifted))                # (tile_n,1)


# --------------------------------------------------------------------------
# Tiling helpers
# --------------------------------------------------------------------------
def _vmem_capacity_bytes():
    try:
        cap = getattr(pltpu.get_tpu_info(), "vmem_capacity_bytes", None)
        if cap:
            return int(cap)
    except Exception:
        pass
    return 64 * 1024 * 1024   # conservative fallback: v7x per-TensorCore VMEM


def _choose_tile_n(n, per_row_bytes, vmem_budget_bytes, max_tile=8192):
    """Largest multiple-of-8 row tile whose per-step working set fits budget."""
    tile = vmem_budget_bytes // max(per_row_bytes, 1)
    tile = min(tile, max_tile)
    if n >= 8:
        tile = min(tile, (n // 8) * 8)   # keep the ragged tail a partial block
    return max(8, (tile // 8) * 8)


def _compiler_params(vmem_cap):
    return pltpu.CompilerParams(
        # Independent per-row tiles + per-block outputs -> fully parallel grid
        # (shards across both TensorCores on v7x; no-op on v5e/v6e).
        dimension_semantics=("parallel",),
        # Scoped-VMEM limit derived from the physical capacity of this
        # generation (≈48 MiB on v7x, ≈96 MiB on v5e/v6e), with headroom.
        vmem_limit_bytes=int(vmem_cap * 0.75),
    )


# --------------------------------------------------------------------------
# Wrappers
# --------------------------------------------------------------------------
def label_smoothing_loss(x, target, *, tile_n=None):
    """x: (N, C) logits, target: (N, C) soft/one-hot labels (any float dtype).

    Returns the scalar f32 label-smoothed loss (training-mode forward).
    Pass bf16 targets (and/or logits) to halve HBM traffic; the kernel casts
    to f32 internally, matching x.float()/target.float().
    """
    N, C = x.shape
    assert target.shape == (N, C)

    vmem_cap = _vmem_capacity_bytes()
    if tile_n is None:
        # Budget double-buffered raw input blocks PLUS ~4 f32 (tile_n, C)
        # in-kernel temporaries (x_f32, w, shifted/logprobs, exp) + output.
        per_row = (2 * C * (x.dtype.itemsize + target.dtype.itemsize)
                   + 4 * C * 4 + 16)
        tile_n = _choose_tile_n(N, per_row, int(vmem_cap * 0.55))

    grid = (pl.cdiv(N, tile_n),)
    per_row_loss = pl.pallas_call(
        _label_smoothing_dense_kernel,
        out_shape=jax.ShapeDtypeStruct((N, 1), jnp.float32),
        grid_spec=pltpu.PrefetchScalarGridSpec(
            num_scalar_prefetch=0,
            grid=grid,
            in_specs=[
                pl.BlockSpec((tile_n, C), lambda i: (i, 0)),
                pl.BlockSpec((tile_n, C), lambda i: (i, 0)),
            ],
            out_specs=pl.BlockSpec((tile_n, 1), lambda i: (i, 0)),
        ),
        compiler_params=_compiler_params(vmem_cap),
    )(x, target)

    # Tiny final reduction outside the kernel; out_shape is exactly (N, 1) so
    # no padded/garbage rows can reach this mean.
    return jnp.mean(per_row_loss)


def label_smoothing_loss_int(x, labels, *, tile_n=None):
    """Integer-label fast path. x: (N, C) logits, labels: (N,) int class ids."""
    N, C = x.shape
    assert labels.shape == (N,)
    labels2d = labels.astype(jnp.int32).reshape(N, 1)

    vmem_cap = _vmem_capacity_bytes()
    if tile_n is None:
        # Inputs: logits + tiny label column; temporaries: x_f32, shifted,
        # exp, iota/select (~4 f32-sized (tile_n, C) arrays).
        per_row = 2 * (C * x.dtype.itemsize + 4) + 4 * C * 4 + 16
        tile_n = _choose_tile_n(N, per_row, int(vmem_cap * 0.55))

    grid = (pl.cdiv(N, tile_n),)
    per_row_loss = pl.pallas_call(
        _label_smoothing_int_kernel,
        out_shape=jax.ShapeDtypeStruct((N, 1), jnp.float32),
        grid_spec=pltpu.PrefetchScalarGridSpec(
            num_scalar_prefetch=0,
            grid=grid,
            in_specs=[
                pl.BlockSpec((tile_n, 1), lambda i: (i, 0)),   # labels column
                pl.BlockSpec((tile_n, C), lambda i: (i, 0)),   # logits
            ],
            out_specs=pl.BlockSpec((tile_n, 1), lambda i: (i, 0)),
        ),
        compiler_params=_compiler_params(vmem_cap),
    )(labels2d, x)

    return jnp.mean(per_row_loss)


# --------------------------------------------------------------------------
# Reference + demo
# --------------------------------------------------------------------------
def _reference(x, target):
    x = x.astype(jnp.float32)
    target = target.astype(jnp.float32)
    logprobs = jax.nn.log_softmax(x, axis=-1)
    nll = -jnp.sum(logprobs * target, axis=-1)
    smooth = -jnp.mean(logprobs, axis=-1)
    return jnp.mean(CONFIDENCE * nll + SMOOTHING * smooth)


if __name__ == "__main__":
    key = jax.random.PRNGKey(0)
    kx, kt = jax.random.split(key)

    # Small demo shape; N deliberately not a multiple of 8 to exercise the
    # no-pad ragged-tail path (grid = cdiv(N, tile_n), masked boundary write).
    N, C = 20, 32
    x = jax.random.normal(kx, (N, C), dtype=jnp.float32)
    labels = jax.random.randint(kt, (N,), 0, C)
    target = jax.nn.one_hot(labels, C, dtype=jnp.float32)

    ref = _reference(x, target)

    # Dense soft-target path (targets streamed as bf16: exact for one-hot /
    # smoothed labels, halves target-side HBM traffic).
    loss_dense = label_smoothing_loss(x, target.astype(jnp.bfloat16))
    jax.block_until_ready(loss_dense)
    assert jnp.allclose(loss_dense, ref, atol=1e-5, rtol=1e-5), (loss_dense, ref)

    # Integer-label fast path (no dense target stream at all).
    loss_int = label_smoothing_loss_int(x, labels)
    jax.block_until_ready(loss_int)
    assert jnp.allclose(loss_int, ref, atol=1e-5, rtol=1e-5), (loss_int, ref)

    print("KERNEL_OK")
</pallas_src>

<mosaic_0001>
module attributes {stable_mosaic.version = 11 : i64} {
  func.func @_label_smoothing_dense_kernel(%arg0: i32, %arg1: memref<16x32xf32, #tpu.memory_space<vmem>>, %arg2: memref<16x32xbf16, #tpu.memory_space<vmem>>, %arg3: memref<16x1xf32, #tpu.memory_space<vmem>>) attributes {dimension_semantics = [#tpu.dimension_semantics<parallel>], iteration_bounds = array<i64: 2>, scalar_prefetch = 0 : i64, scratch_operands = 0 : i64, tpu.core_type = #tpu.core_type<tc>, window_params = [{transform_indices = @transform_0, window_bounds = array<i64: 16, 32>}, {transform_indices = @transform_1, window_bounds = array<i64: 16, 32>}, {transform_indices = @transform_2, window_bounds = array<i64: 16, 1>}]} {
    %c0 = arith.constant 0 : index
    %c0_0 = arith.constant 0 : index
    %0 = vector.load %arg1[%c0, %c0_0] : memref<16x32xf32, #tpu.memory_space<vmem>>, vector<16x32xf32>
    %c0_1 = arith.constant 0 : index
    %c0_2 = arith.constant 0 : index
    %1 = vector.load %arg2[%c0_1, %c0_2] : memref<16x32xbf16, #tpu.memory_space<vmem>>, vector<16x32xbf16>
    %2 = arith.extf %1 : vector<16x32xbf16> to vector<16x32xf32>
    %cst = arith.constant 0.949999988 : f32
    %3 = vector.broadcast %cst : f32 to vector<16x32xf32>
    %4 = arith.mulf %3, %2 : vector<16x32xf32>
    %cst_3 = arith.constant 1.562500e-03 : f32
    %5 = vector.broadcast %cst_3 : f32 to vector<16x32xf32>
    %6 = arith.addf %4, %5 : vector<16x32xf32>
    %cst_4 = arith.constant dense<0xFF800000> : vector<16xf32>
    %7 = vector.multi_reduction <maximumf>, %0, %cst_4 [1] : vector<16x32xf32> to vector<16xf32>
    %8 = vector.shape_cast %7 : vector<16xf32> to vector<16x1xf32>
    %9 = vector.broadcast %8 : vector<16x1xf32> to vector<16x32xf32>
    %10 = arith.subf %0, %9 : vector<16x32xf32>
    %11 = math.exp %10 : vector<16x32xf32>
    %cst_5 = arith.constant dense<0.000000e+00> : vector<16xf32>
    %12 = vector.multi_reduction <add>, %11, %cst_5 [1] : vector<16x32xf32> to vector<16xf32>
    %13 = vector.shape_cast %12 : vector<16xf32> to vector<16x1xf32>
    %14 = math.log %13 : vector<16x1xf32>
    %15 = vector.broadcast %14 : vector<16x1xf32> to vector<16x32xf32>
    %16 = arith.subf %10, %15 : vector<16x32xf32>
    %17 = arith.mulf %16, %6 : vector<16x32xf32>
    %cst_6 = arith.constant dense<0.000000e+00> : vector<16xf32>
    %18 = vector.multi_reduction <add>, %17, %cst_6 [1] : vector<16x32xf32> to vector<16xf32>
    %19 = vector.shape_cast %18 : vector<16xf32> to vector<16x1xf32>
    %cst_7 = arith.constant 0.000000e+00 : f32
    %20 = vector.broadcast %cst_7 : f32 to vector<16x1xf32>
    %21 = arith.subf %20, %19 : vector<16x1xf32>
    %c0_8 = arith.constant 0 : index
    %c0_9 = arith.constant 0 : index
    %22 = vector.load %arg3[%c0_8, %c0_9] : memref<16x1xf32, #tpu.memory_space<vmem>>, vector<16x1xf32>
    tpu.vector_store %arg3[%c0_8, %c0_9], %21 {strides = array<i32>} : memref<16x1xf32, #tpu.memory_space<vmem>>, vector<16x1xf32>,
    return
  }
  func.func @transform_0(%arg0: i32) -> (i32, i32) {
    %c0_i32 = arith.constant 0 : i32
    %c0_i32_0 = arith.constant 0 : i32
    return %arg0, %c0_i32 : i32, i32
  }
  func.func @transform_1(%arg0: i32) -> (i32, i32) {
    %c0_i32 = arith.constant 0 : i32
    %c0_i32_0 = arith.constant 0 : i32
    return %arg0, %c0_i32 : i32, i32
  }
  func.func @transform_2(%arg0: i32) -> (i32, i32) {
    %c0_i32 = arith.constant 0 : i32
    %c0_i32_0 = arith.constant 0 : i32
    return %arg0, %c0_i32 : i32, i32
  }
}

</mosaic_0001>

<bundles_post_ra>
// kernel: tpu_custom_call.1
= control target key start
LH: loop header
LB: loop body
LE: loop exit
PB: predicated region body
PF: predicated region fallthrough
CT: control target
= control target key end

     0   :  { %7 = vsyncpa [#allocation3], 0  ;;  %s1076_s0 = inlined_call_operand.hbm [shape: f32[20,32], index: 0, kind: input, shape index: {}]   ;;  %s1077_s1 = inlined_call_operand.hbm [shape: bf16[20,32], index: 1, kind: input, shape index: {}]   ;;  %s1078_s2 = inlined_call_operand.vmem [shape: f32[20,1], index: 2, kind: output, shape index: {}]  }
   0x1   :  { %9 = vsyncpa [#allocation3 + $0x1], 0 }
   0x2   :  { %10 = vsyncpa [#allocation5], 0 }
   0x3   :  { %12 = vsyncpa [#allocation5 + $0x1], 0  ;;  %s864_s9 = smov 0   ;;  %s866_s10 = smov 0  }
   0x4   :  { %s868_s11 = smov 0   ;;  %s870_s12 = smov 0  }
   0x5 LB: > { %s883_s13 = sadd.s32 4294967295, %s809_s12   ;;  %s886_s14 = sadd.s32 1, %s809_s12   ;;  %s809_s12 = sphi %s870_s12, %s1086_s12   ;;  %s805_s11 = sphi %s868_s11, %s1085_s11   ;;  %s801_s10 = sphi %s866_s10, %s1084_s10   ;;  %s797_s9 = sphi %s864_s9, %s1083_s9  }
   0x6   : > { %s22_s15 = ssub.s32 %s809_s12, %s886_s14  ;;  %s25_s16 = sadd.s32 1, %s805_s11 }
   0x7   : > { %p23_p0 = scmp.eq.s32.totalorder %s22_s15, 0  ;;  %p32_p1 = scmp.ne.s32.totalorder %s805_s11, %s801_s10 }
   0x8   : > { %p33_p2 = scmp.eq.s32.totalorder %s809_s12, 0  ;;  %p38_p3 = scmp.ne.s32.totalorder %s801_s10, %s797_s9 }
   0x9   : > { %s896_s17 = scalar_select %p23_p0, %s805_s11, %s25_s16  }
   0xa   : > { %p898_p4 = por %p33_p2, %p32_p1  ;;  %p39_p5 = scmp.eq.s32.totalorder %s883_s13, 0 }
   0xb   : > { %p88_p6 = scmp.eq.s32.totalorder %s883_s13, 1  ;;  %p528_p9 = scmp.ge.s32.totalorder %s809_s12, 2 }
   0xc   : > { %p904_p7 = por %p39_p5, %p38_p3 }
   0xd   : > { %p908_p8 = por %p88_p6, %p32_p1  ;;  %110 = sbr.rel (%p528_p9) target bundleno = 90 (0x5a), region = 16 }
   0xf   : > { %s1081_s20 = scalar_select %p908_p8, 1, 0 }
  0x14   : > { %113 = sbr.rel (!%p898_p4) target bundleno = 55 (0x37), region = 20  ;;  %s114_s21 = sand.u32 (%p898_p4), 1, %s805_s11  }
  0x15   : > { %s530_s22 = sshll.u32 (%p898_p4), %s809_s12, 1  ;;  %s529_s23 = sshll.u32 (%p898_p4), %s114_s21, 4 }
  0x16   : > { %s120_s24 = ssub.s32 (%p898_p4), 3, %s530_s22  ;;  %s920_s27 = scalar_lea.sflag (%p898_p4), [#allocation3], %s114_s21 }
  0x17   : > { %p121_p10 = scmp.lt.s32.totalorder (%p898_p4), %s120_s24, 2  ;;  %s118_s28 = scalar_lea.vmem (%p898_p4), [#allocation2], %s529_s23 }
  0x1b   : > { %s1088_s24 = smov (!%p121_p10, %s120_s24), 2 }
  0x1c   : > { %s917_s25 = sshll.u32 %s1088_s24, 7 }
  0x1d   : > { %s125_s26 = ssub.s32 256, %s917_s25 }
  0x1e   : > { %126 = vsyncadd %s920_s27, %s125_s26  ;;  %p532_p11 = scmp.ne.s32.totalorder %s917_s25, 0  ;;  %s564_s29 = sshll.u32 %s809_s12, 8 }
  0x1f   : > { %s928_s4 = scalar_lea.hbm %s1076_s0, %s564_s29  ;;  %s131_s5 = sshll.u32 %s118_s28, 4  ;;  %s930_s5 = int_to_ptr.vmem [resolvable:$true] %s131_s5 }
  0x20   : > { %s683_s6 = scalar_lea.hbm %s928_s4, %s917_s25  ;;  %s687_s9 = scalar_lea.hbm %s1076_s0, 384 }
  0x21   : > { %p684_p12 = scmp.ne.s32.totalorder %s928_s4, %s683_s6  ;;  %p688_p1 = scmp.lt.u32.totalorder %s928_s4, %s1076_s0 }
  0x22   : > { %p689_p2 = scmp.lt.u32.totalorder %s687_s9, %s683_s6  ;;  %p691_p5 = scmp.lt.u32.totalorder %s683_s6, %s928_s4 }
  0x23   : > { %p685_p13 = pnand %p684_p12, %p532_p11 }
  0x24   : > { %p690_p3 = por %p689_p2, %p688_p1 }
  0x25   : > { %p686_p0 = pneg %p685_p13 }
  0x26   : > { %p692_p6 = por %p691_p5, %p690_p3 }
  0x28   : > { %p693_p9 = pnand %p692_p6, %p686_p0 }
  0x2a   : > { %696 = shalt.err (!%p693_p9)
}
  0x2b   : > { %s697_s21 = scalar_lea.vmem %s930_s5, %s917_s25  ;;  %s843_s22 = smov [#allocation2]  }
  0x2c   : > { %p698_p10 = scmp.ne.s32.totalorder %s930_s5, %s697_s21  ;;  %s701_s23 = sshll.u32 %s843_s22, 4  ;;  %s702_s23 = int_to_ptr.vmem [resolvable:$false] %s701_s23 }
  0x2d   : > { %s703_s24 = scalar_lea.vmem %s702_s23, 512  ;;  %p704_p8 = scmp.lt.s32.totalorder %s930_s5, %s702_s23 }
  0x2e   : > { %p699_p12 = pnand %p698_p10, %p532_p11  ;;  %p705_p1 = scmp.lt.s32.totalorder %s703_s24, %s697_s21 }
  0x30   : > { %p700_p13 = pneg %p699_p12  ;;  %p706_p2 = por %p705_p1, %p704_p8 }
  0x32   : > { %p707_p3 = pnand %p706_p2, %p700_p13 }
  0x34   : > { %710 = shalt.err (!%p707_p3)
}
  0x35   : > { %s844_s26 = smov 128   ;;  %s845_s28 = smov 8  }
  0x36   : > { %137 = dma.hbm_to_vmem [thread:$0]  (%p532_p11), %s928_s4, %s917_s25, %s930_s5, %s920_s27, %s844_s26, %s844_s26, %s845_s28  }
  0x37 PF: > { %140 = sbr.rel (!%p898_p4) target bundleno = 90 (0x5a), region = 24  ;;  %s141_s29 = sand.u32 (%p898_p4), 1, %s805_s11  }
  0x38   : > { %s537_s30 = sshll.u32 (%p898_p4), %s809_s12, 1  ;;  %s536_s3 = sshll.u32 (%p898_p4), %s141_s29, 3 }
  0x39   : > { %s147_s6 = ssub.s32 (%p898_p4), 3, %s537_s30  ;;  %s964_s9 = scalar_lea.sflag (%p898_p4), [#allocation5], %s141_s29 }
  0x3a   : > { %p148_p8 = scmp.lt.s32.totalorder (%p898_p4), %s147_s6, 2  ;;  %s145_s25 = scalar_lea.vmem (%p898_p4), [#allocation4], %s536_s3 }
  0x3e   : > { %s1090_s6 = smov (!%p148_p8, %s147_s6), 2 }
  0x3f   : > { %s961_s7 = sshll.u32 %s1090_s6, 6 }
  0x40   : > { %s152_s8 = ssub.s32 128, %s961_s7 }
  0x41   : > { %153 = vsyncadd %s964_s9, %s152_s8  ;;  %p539_p4 = scmp.ne.s32.totalorder %s961_s7, 0  ;;  %s565_s18 = sshll.u32 %s809_s12, 7 }
  0x42   : > { %s972_s5 = scalar_lea.hbm %s1077_s1, %s565_s18  ;;  %s158_s15 = sshll.u32 %s145_s25, 4  ;;  %s974_s15 = int_to_ptr.vmem [resolvable:$true] %s158_s15 }
  0x43   : > { %s711_s16 = scalar_lea.hbm %s972_s5, %s961_s7  ;;  %s715_s23 = scalar_lea.hbm %s1077_s1, 192 }
  0x44   : > { %p712_p11 = scmp.ne.s32.totalorder %s972_s5, %s711_s16  ;;  %p716_p6 = scmp.lt.u32.totalorder %s972_s5, %s1077_s1 }
  0x45   : > { %p717_p9 = scmp.lt.u32.totalorder %s715_s23, %s711_s16  ;;  %p719_p12 = scmp.lt.u32.totalorder %s711_s16, %s972_s5 }
  0x46   : > { %p713_p0 = pnand %p712_p11, %p539_p4 }
  0x47   : > { %p718_p10 = por %p717_p9, %p716_p6 }
  0x48   : > { %p714_p5 = pneg %p713_p0 }
  0x49   : > { %p720_p13 = por %p719_p12, %p718_p10 }
  0x4b   : > { %p721_p1 = pnand %p720_p13, %p714_p5 }
  0x4d   : > { %724 = shalt.err (!%p721_p1)
}
  0x4e   : > { %s725_s28 = scalar_lea.vmem %s974_s15, %s961_s7  ;;  %s846_s29 = smov [#allocation4]  }
  0x4f   : > { %p726_p2 = scmp.ne.s32.totalorder %s974_s15, %s725_s28  ;;  %s729_s30 = sshll.u32 %s846_s29, 4  ;;  %s730_s30 = int_to_ptr.vmem [resolvable:$false] %s729_s30 }
  0x50   : > { %s731_s3 = scalar_lea.vmem %s730_s30, 256  ;;  %p732_p11 = scmp.lt.s32.totalorder %s974_s15, %s730_s30 }
  0x51   : > { %p727_p3 = pnand %p726_p2, %p539_p4  ;;  %p733_p0 = scmp.lt.s32.totalorder %s731_s3, %s725_s28 }
  0x53   : > { %p728_p8 = pneg %p727_p3  ;;  %p734_p6 = por %p733_p0, %p732_p11 }
  0x55   : > { %p735_p9 = pnand %p734_p6, %p728_p8 }
  0x57   : > { %738 = shalt.err (!%p735_p9)
}
  0x58   : > { %s847_s6 = smov 64   ;;  %s848_s8 = smov 4  }
  0x59   : > { %164 = dma.hbm_to_vmem [thread:$0]  (%p539_p4), %s972_s5, %s961_s7, %s974_s15, %s964_s9, %s847_s6, %s847_s6, %s848_s8  }
  0x5a PF: > { %p543_p5 = scmp.ge.s32.totalorder %s809_s12, 1  ;;  %p166_p10 = scmp.lt.s32.totalorder %s809_s12, 3 }
  0x5c   : > { %p167_p12 = pnand %p543_p5, %p166_p10 }
  0x5d   : > { %s1004_s25 = sand.u32 (!%p167_p12), 1, %s801_s10  }
  0x5e   : > { %170 = sbr.rel (%p167_p12) target bundleno = 623 (0x26f), region = 28  ;;  %s544_s18 = sshll.u32 (!%p167_p12), %s1004_s25, 4 }
  0x5f   : > { %s173_s27 = scalar_lea.sflag (!%p167_p12), [#allocation3], %s1004_s25  ;;  %s176_s4 = scalar_lea.vmem (!%p167_p12), [#allocation2], %s544_s18 }
  0x65   : > { %788 = dma.done.wait (%p904_p7), %s173_s27, 256  }
  0x66   : > { %790 = vsyncadd (%p904_p7), %s173_s27, 4294967040  ;;  %s545_s12 = sshll.u32 %s1004_s25, 3  ;;  %s182_s7 = scalar_lea.sflag [#allocation5], %s1004_s25 }
  0x67   : > { %s185_s9 = scalar_lea.vmem [#allocation4], %s545_s12 }
  0x68   : > { %792 = dma.done.wait (%p904_p7), %s182_s7, 128  }
  0x69   : > { %794 = vsyncadd (%p904_p7), %s182_s7, 4294967168  ;;  %vm235_vm0 = vcmask 261120   ;;  %v225_v0 = vld [vmem:[%s176_s4] sm:$0xff]  ;;  %v226_v1 = vld [vmem:[%s176_s4 + $0x8] sm:$0xff]  ;;  %vm270_vm1 = vcmask 7168   ;;  %s1028_s19 = scalar_lea.vmem [#allocation6], %s544_s18  }
  0x6a   : > { %v236_v2 = vsel %vm235_vm0, %v225_v0, -inf  ;;  %v239_v3 = vsel %vm235_vm0, %v226_v1, -inf  ;;  %v570_v15 = vld [vmem:[%s185_s9] sm:$0xff]   ;;  %p1082_p7 = scmp.ne.s32.totalorder %s1081_s20, 0 }
  0x6b   : > { %237 = vmax.xlane.f32.xlu0 %v236_v2  ;;  %v571_v17 = vunpack.c.l.bf16 %v570_v15  ;;  %v572_v19 = vunpack.c.h.bf16 %v570_v15  ;;  %s548_s5 = sshll.u32 (%p1082_p7), %s883_s13, 1  ;;  %s566_s15 = sshll.u32 (%p1082_p7), %s883_s13, 4 }
  0x6c   : > { %s281_s16 = ssub.s32 (%p1082_p7), 3, %s548_s5  ;;  %s1039_s23 = scalar_lea.vmem (%p1082_p7), %s1078_s2, %s566_s15  }
  0x6d   : > { %v231_v18 = vmul.f32 0.95, %v571_v17  ;;  %v232_v23 = vmul.f32 0.95, %v572_v19  ;;  %p282_p4 = scmp.lt.s32.totalorder (%p1082_p7), %s281_s16, 2 }
  0x6f   : > { %240 = vmax.xlane.f32.xlu0 %v239_v3  ;;  %v233_v22 = vadd.f32 0.0015625, %v231_v18  ;;  %v234_v28 = vadd.f32 0.0015625, %v232_v23 }
  0xf8   : > { %v238_v4 = vpop.xlane.xlu0 %237 }
  0xf9   : > { %v242_v5 = vsub.f32 %v225_v0, %v238_v4 }
  0xfb   : > { %v244_v6 = vmul.f32 1.442695, %v242_v5 }
  0xfc   : > { %v241_v7 = vpop.xlane.xlu0 %240 }
  0xfd   : > { %675 = vpow2.f32 %v244_v6  ;;  %v243_v8 = vsub.f32 %v226_v1, %v241_v7 }
  0xff   : > { %v246_v9 = vmul.f32 1.442695, %v243_v8 }
 0x101   : > { %677 = vpow2.f32 %v246_v9 }
 0x107   : > { %v676_v10 = vpop.eup %675 }
 0x108   : > { %v248_v11 = vsel %vm235_vm0, %v676_v10, 0.0 }
 0x109   : > { %249 = vadd.xlane.f32.xlu1 %v248_v11 }
 0x10b   : > { %v678_v12 = vpop.eup %677 }
 0x10c   : > { %v251_v13 = vsel %vm235_vm0, %v678_v12, 0.0 }
 0x10d   : > { %252 = vadd.xlane.f32.xlu1 %v251_v13 }
 0x196   : > { %v250_v14 = vpop.xlane.xlu1 %249 }
 0x197   : > { %679 = vlog2.f32 %v250_v14 }
 0x19a   : > { %v253_v16 = vpop.xlane.xlu1 %252 }
 0x19b   : > { %681 = vlog2.f32 %v253_v16 }
 0x1a1   : > { %v680_v20 = vpop.eup %679 }
 0x1a2   : > { %v255_v21 = vmul.f32 0.6931472, %v680_v20 }
 0x1a4   : > { %v258_v24 = vsub.f32 %v242_v5, %v255_v21 }
 0x1a5   : > { %v682_v25 = vpop.eup %681 }
 0x1a6   : > { %v257_v26 = vmul.f32 0.6931472, %v682_v25  ;;  %v260_v27 = vmul.f32 %v258_v24, %v233_v22 }
 0x1a8   : > { %v262_v29 = vsel %vm235_vm0, %v260_v27, 0.0  ;;  %v259_v30 = vsub.f32 %v243_v8, %v257_v26 }
 0x1a9   : > { %263 = vadd.xlane.f32.xlu0 %v262_v29 }
 0x1aa   : > { %v261_v31 = vmul.f32 %v259_v30, %v234_v28 }
 0x1ac   : > { %v265_v32 = vsel %vm235_vm0, %v261_v31, 0.0 }
 0x1ad   : > { %266 = vadd.xlane.f32.xlu1 %v265_v32 }
 0x236   : > { %v264_v33 = vpop.xlane.xlu0 %263 }
 0x237   : > { %v268_v34 = vsub.f32 0.0, %v264_v33  ;;  %279 = sbr.rel (!%p1082_p7) target bundleno = 623 (0x26f), region = 40 }
 0x239   : > { %271 = vst.msk [vmem:[%s1028_s19] sm:$0xff] %vm270_vm1, %v268_v34 }
 0x23a   : > { %v267_v35 = vpop.xlane.xlu1 %266 }
 0x23b   : > { %v269_v36 = vsub.f32 0.0, %v267_v35 }
 0x23d   : > { %272 = vst.msk [vmem:[%s1028_s19 + $0x8] sm:$0xff] %vm270_vm1, %v269_v36 }
 0x23e   : > { %s1092_s16 = smov (!%p282_p4, %s281_s16), 2 }
 0x23f   : > { %s549_s24 = sshll.u32 %s1092_s16, 7 }
 0x240   : > { %p552_p13 = scmp.eq.s32.totalorder %s549_s24, 0 }
 0x241   : > { %s1045_s20 = sshrl.u32 (!%p552_p13), %s1092_s16, 1 }
 0x242   : > { %290 = sbr.rel (%p552_p13) target bundleno = 623 (0x26f), region = 44  ;;  %p553_p1 = scmp.le.s32.totalorder (!%p552_p13), %s1045_s20, 0 }
 0x249   : > { %470 = sbr.rel (%p553_p1) target bundleno = 602 (0x25a), region = 135  ;;  %s811_s13 = smov (!%p553_p1), %s1039_s23  }
 0x24a   : > { %s815_s26 = smov (!%p553_p1), %s1028_s19   ;;  %s819_s28 = smov (!%p553_p1), 0  }
 0x24b   : > { %s823_s29 = smov (!%p553_p1), 0  }
 0x250 LB: >> { %v354_v37 = vld [vmem:[%s817_s26] sm:$0xff]  ;;  %v356_v38 = vld [vmem:[%s817_s26 + $0x8] sm:$0xff]  ;;  %s358_s30 = sadd.s32 1, %s821_s28  ;;  %s348_s29 = sadd.s32 1, %s825_s29   ;;  %s825_s29 = sphi %s823_s29, %s348_s29   ;;  %s821_s28 = sphi %s819_s28, %s820_s28   ;;  %s817_s26 = sphi %s815_s26, %s363_s26   ;;  %s813_s13 = sphi %s811_s13, %s364_s13  }
 0x251   : >> { %355 = vst [vmem:[%s813_s13] sm:$0xff] %v354_v37  ;;  %357 = vst [vmem:[%s813_s13 + $0x8] sm:$0xff] %v356_v38  ;;  %p359_p2 = scmp.ge.s32.totalorder %s358_s30, %s1045_s20  ;;  %p347_p3 = scmp.ge.s32.totalorder %s348_s29, %s1045_s20 }
 0x253   : >> { %s1094_s30 = smov (%p359_p2, %s358_s30), 0  ;;  %350 = sbr.rel (!%p347_p3) target bundleno = 592 (0x250), region = 141 }
 0x254   : >> { %s554_s3 = sshll.u32 %s1094_s30, 4  ;;  %s820_s28 = smov %s1094_s30  }
 0x255   : >> { %s363_s26 = scalar_lea.vmem %s1028_s19, %s554_s3 [#allocation6]   ;;  %s364_s13 = scalar_lea.vmem %s1039_s23, %s554_s3  }
 0x25a PF: > { %s1055_s6 = sand.u32 1, %s1092_s16   ;;  %s567_s8 = sshll.u32 %s1045_s20, 4 }
 0x25b   : > { %s369_s25 = scalar_lea.vmem %s1028_s19, %s567_s8 [#allocation6]   ;;  %s371_s18 = scalar_lea.vmem %s1039_s23, %s567_s8  }
 0x25c   : > { %p559_p8 = scmp.le.s32.totalorder %s1055_s6, 0 }
 0x25d   : > { %s827_s27 = smov (!%p559_p8), %s371_s18   ;;  %s831_s4 = smov (!%p559_p8), %s369_s25  }
 0x25e   : > { %484 = sbr.rel (%p559_p8) target bundleno = 623 (0x26f), region = 146  ;;  %s835_s12 = smov (!%p559_p8), 0  }
 0x25f   : > { %s839_s7 = smov (!%p559_p8), 0  }
 0x265 LB: >> { %v381_v39 = vld [vmem:[%s833_s4] sm:$0xff]  ;;  %s383_s9 = sadd.s32 1, %s837_s12  ;;  %s375_s7 = sadd.s32 1, %s841_s7   ;;  %s841_s7 = sphi %s839_s7, %s375_s7   ;;  %s837_s12 = sphi %s835_s12, %s836_s12   ;;  %s833_s4 = sphi %s831_s4, %s388_s4   ;;  %s829_s27 = sphi %s827_s27, %s389_s27  }
 0x266   : >> { %382 = vst [vmem:[%s829_s27] sm:$0xff] %v381_v39  ;;  %p384_p11 = scmp.ge.s32.totalorder %s383_s9, %s1055_s6  ;;  %p374_p0 = scmp.ge.s32.totalorder %s375_s7, %s1055_s6 }
 0x268   : >> { %s1096_s9 = smov (%p384_p11, %s383_s9), 0  ;;  %377 = sbr.rel (!%p374_p0) target bundleno = 613 (0x265), region = 152 }
 0x269   : >> { %s560_s19 = sshll.u32 %s1096_s9, 3  ;;  %s836_s12 = smov %s1096_s9  }
 0x26a   : >> { %s388_s4 = scalar_lea.vmem %s369_s25, %s560_s19 [#allocation6]   ;;  %s389_s27 = scalar_lea.vmem %s371_s18, %s560_s19  }
 0x26f PF: > { %p15_p6 = scmp.ge.s32.totalorder %s886_s14, 4   ;;  %s1083_s9 = smov %s801_s10 }
 0x270   : > { %s1084_s10 = smov %s805_s11  ;;  %s1085_s11 = smov %s896_s17 }
 0x271   : > { %s1086_s12 = smov %s886_s14  ;;  %17 = sbr.rel (!%p15_p6) target bundleno = 5 (0x5), region = 163 }
 0x278   :  { %405 = vsyncpa [#allocation3], 1 }
 0x279   :  { %407 = vsyncpa [#allocation3 + $0x1], 1 }
 0x27a   :  { %408 = vsyncpa [#allocation5], 1 }
 0x27b   :  { %410 = vsyncpa [#allocation5 + $0x1], 1 }

</bundles_post_ra>
